<compile_context>
chip_gen: v6e
topology: v6e:2x2x1
jax: 0.10.0
libtpu: 0.0.40
codegen_flags: <defaults>
</compile_context>

<pallas_src>
import functools

import jax
import jax.numpy as jnp
from jax import lax
from jax.experimental import pallas as pl
from jax.experimental.pallas import tpu as pltpu

SMOOTHING = 0.1
CONFIDENCE = 1.0 - SMOOTHING
TEMPERATURE_INIT = 0.07   # cfg.loss.temperature.value (constant temperature)


def nce_kernel(temp_ref, f1_row_ref, f2m_row_ref, f1t_col_ref, f2mt_col_ref,
               sel_ref, out_ref,
               m1_ref, l1_ref, s1_ref, d1_ref,
               m2_ref, l2_ref, s2_ref, d2_ref, *, n_total):
    t = pl.program_id(0)           # row (query) tile   -> "parallel"
    c = pl.program_id(1)           # column (key) tile  -> "arbitrary" reduction
    n_ct = pl.num_programs(1)
    tb = f1_row_ref.shape[0]

    inv_temp = 1.0 / temp_ref[0]   # f32 scalar from SMEM

    @pl.when(c == 0)
    def _init():
        neg_inf = jnp.full_like(m1_ref, -jnp.inf)
        zero = jnp.zeros_like(l1_ref)
        m1_ref[...] = neg_inf
        m2_ref[...] = neg_inf
        l1_ref[...] = zero
        l2_ref[...] = zero
        s1_ref[...] = zero
        s2_ref[...] = zero

    # Two canonical (tb, D) @ (D, tb) MXU matmuls; 1/temp applied to the f32
    # result so low-precision operands never round the temperature scale.
    blk1 = jnp.dot(f1_row_ref[...], f2mt_col_ref[...],
                   preferred_element_type=jnp.float32) * inv_temp   # rows of logits   (i2t)
    blk2 = jnp.dot(f2m_row_ref[...], f1t_col_ref[...],
                   preferred_element_type=jnp.float32) * inv_temp   # rows of logits.T (t2i)

    # The diagonal (target logit) of this row tile lives in column block c == t
    # (tn == tm).  Extract it once, from the same MXU values that feed the
    # running max, so the top-1 test below is exactly consistent.
    @pl.when(c == t)
    def _grab_diag():
        is_diag = (lax.broadcasted_iota(jnp.int32, (tb, tb), 1) ==
                   lax.broadcasted_iota(jnp.int32, (tb, tb), 0))
        d1_ref[...] = jnp.sum(jnp.where(is_diag, blk1, 0.0), axis=-1, keepdims=True)
        d2_ref[...] = jnp.sum(jnp.where(is_diag, blk2, 0.0), axis=-1, keepdims=True)

    def online_update(m_ref, l_ref, s_ref, blk):
        blk_max = jnp.max(blk, axis=-1, keepdims=True)              # (tb, 1)
        m_new = jnp.maximum(m_ref[...], blk_max)
        alpha = jnp.exp(m_ref[...] - m_new)                         # 0 at c == 0
        l_ref[...] = alpha * l_ref[...] + jnp.sum(jnp.exp(blk - m_new),
                                                  axis=-1, keepdims=True)
        s_ref[...] = s_ref[...] + jnp.sum(blk, axis=-1, keepdims=True)
        m_ref[...] = m_new

    online_update(m1_ref, l1_ref, s1_ref, blk1)
    online_update(m2_ref, l2_ref, s2_ref, blk2)

    @pl.when(c == n_ct - 1)
    def _finalize():
        sel = sel_ref[...]                                          # (tb, 1) f32
        inv_n = jnp.float32(1.0 / n_total)

        def ce_and_top1(m_ref, l_ref, s_ref, d_ref):
            lse = m_ref[...] + jnp.log(l_ref[...])
            nll = lse - d_ref[...]                                  # -log p[target]
            smooth = lse - s_ref[...] * inv_n                       # -mean_j log p[j]
            ce = CONFIDENCE * nll + SMOOTHING * smooth
            # diag is one of the values the running max saw, so diag >= max
            # <=> the target attains the max (exact ties counted correct).
            correct = (d_ref[...] >= m_ref[...]).astype(jnp.float32)
            return ce, correct

        ce1, ok1 = ce_and_top1(m1_ref, l1_ref, s1_ref, d1_ref)
        ce2, ok2 = ce_and_top1(m2_ref, l2_ref, s2_ref, d2_ref)

        loss_part = jnp.sum(0.5 * (ce1 + ce2))
        i2t_part = jnp.sum(ok1 * sel)
        t2i_part = jnp.sum(ok2 * sel)

        # Pack the three partial sums into this row tile's lane-dense (8, 128)
        # output block: [0,0]=loss, [0,1]=i2t, [0,2]=t2i, zeros elsewhere.
        sub = lax.broadcasted_iota(jnp.int32, (8, 128), 0)
        lane = lax.broadcasted_iota(jnp.int32, (8, 128), 1)
        row0 = sub == 0
        out_ref[...] = jnp.where(row0 & (lane == 0), loss_part,
                                 jnp.where(row0 & (lane == 1), i2t_part,
                                           jnp.where(row0 & (lane == 2), t2i_part,
                                                     jnp.float32(0.0))))


def _round_up(x, m):
    return (x + m - 1) // m * m


def _vmem_estimate(tb, d_pad, isz):
    feats = 4 * 2 * tb * d_pad * isz        # 4 streamed operands, double-buffered
    logits = 10 * tb * tb * 4               # blk1/blk2 + softmax temporaries
    scratch = 8 * tb * 128 * 4              # (tb, 1) f32 scratch, lane-padded
    return feats + logits + scratch + (2 << 20)


def _pick_tile(n, d_pad, isz, budget):
    # The tile is used on the lane axis of the transposed column blocks, so it
    # must be a multiple of 128 that divides N, or N itself.
    cands = [c for c in (512, 256, 128) if c <= n and n % c == 0]
    for tb in cands:
        if _vmem_estimate(tb, d_pad, isz) <= budget:
            return tb
    if cands:
        return cands[-1]
    # TODO(synk): N not divisible by 128 falls back to a single (N, N) tile;
    # pad/mask the batch axis if such shapes ever need to scale.
    return n


def nce_forward(feat1, feat2, ignore_mask=None, temperature=TEMPERATURE_INIT,
                compute_dtype=None, tile=None):
    """JAX wrapper; returns (loss, i2t_acc, t2i_acc) as f32 scalars."""
    n, d = feat1.shape
    if ignore_mask is None:
        ignore_mask = jnp.zeros((n,), jnp.float32)
    mask_f = ignore_mask.astype(jnp.float32)
    keep = 1.0 - mask_f                                           # (N,)

    temp = jnp.clip(jnp.asarray(temperature, jnp.float32), 0.001, 0.5).reshape(1)

    cdt = feat1.dtype if compute_dtype is None else jnp.dtype(compute_dtype)

    # Mask feat2 exactly as the reference does (feat2 * (1 - ignore_mask)).
    feat2m = feat2 * keep[:, None].astype(feat2.dtype)

    # Zero-pad D to a lane-aligned multiple of 128 (doesn't change dot products).
    d_pad = max(128, _round_up(d, 128))
    if d_pad != d:
        pad = [(0, 0), (0, d_pad - d)]
        feat1 = jnp.pad(feat1, pad)
        feat2m = jnp.pad(feat2m, pad)

    f1 = feat1.astype(cdt)          # (N, d_pad)  row-streamed LHS
    f2m = feat2m.astype(cdt)        # (N, d_pad)
    f1_t = f1.T                     # (d_pad, N)  one-time XLA transposes ->
    f2m_t = f2m.T                   #             lane-dense MXU RHS column blocks

    sel = (mask_f < 1.0).astype(jnp.float32).reshape(n, 1)        # rows counted for acc

    # Generation-aware VMEM budget (v7x only has 64 MiB per TensorCore).
    try:
        vmem_cap = int(getattr(pltpu.get_tpu_info(), "vmem_capacity_bytes",
                               64 << 20))
    except Exception:
        vmem_cap = 64 << 20
    budget = (vmem_cap * 3) // 4

    isz = jnp.dtype(cdt).itemsize
    tb = tile if tile is not None else _pick_tile(n, d_pad, isz, budget)
    assert n % tb == 0 and (tb % 128 == 0 or tb == n), (n, tb)
    n_rt = n // tb                                # row tiles == column tiles
    vmem_limit = int(min(max(_vmem_estimate(tb, d_pad, isz), 16 << 20), budget))

    kernel = functools.partial(nce_kernel, n_total=n)

    out = pl.pallas_call(
        kernel,
        grid=(n_rt, n_rt),
        out_shape=jax.ShapeDtypeStruct((8, 128 * n_rt), jnp.float32),
        in_specs=[
            pl.BlockSpec(memory_space=pltpu.MemorySpace.SMEM),      # temperature (1,)
            pl.BlockSpec((tb, d_pad), lambda t, c: (t, 0)),         # feat1 row tile
            pl.BlockSpec((tb, d_pad), lambda t, c: (t, 0)),         # feat2m row tile
            pl.BlockSpec((d_pad, tb), lambda t, c: (0, c)),         # feat1.T column tile
            pl.BlockSpec((d_pad, tb), lambda t, c: (0, c)),         # feat2m.T column tile
            pl.BlockSpec((tb, 1), lambda t, c: (t, 0)),             # sel row tile
        ],
        out_specs=pl.BlockSpec((8, 128), lambda t, c: (0, t)),
        scratch_shapes=[pltpu.VMEM((tb, 1), jnp.float32)] * 8,      # m/l/s/diag x 2 dirs
        compiler_params=pltpu.CompilerParams(
            dimension_semantics=("parallel", "arbitrary"),
            vmem_limit_bytes=vmem_limit),
    )(temp, f1, f2m, f1_t, f2m_t, sel)

    # Tiny cross-tile reduction + normalization in XLA (keeps the grid parallel).
    parts = out.reshape(8, n_rt, 128)
    loss_sum = jnp.sum(parts[0, :, 0])
    i2t_sum = jnp.sum(parts[0, :, 1])
    t2i_sum = jnp.sum(parts[0, :, 2])

    keep_sum = jnp.sum(keep)
    sel_sum = jnp.sum(sel)
    # mean(loss[None,:] * keep[:,None]) == sum(loss_vec) * sum(keep) / N^2
    loss = loss_sum * keep_sum * jnp.float32(1.0 / (n * n))
    # NOTE: if every row is ignored, sel_sum == 0 and the accuracies are NaN —
    # identical to the PyTorch reference behaviour.
    i2t_acc = i2t_sum / sel_sum
    t2i_acc = t2i_sum / sel_sum
    # TODO(synk): global_reduce=True branch (cross-device all-gather of feat2 /
    # ignore_mask, GatherLayer) is a collective and is not implemented here.
    return loss, i2t_acc, t2i_acc


def nce_reference(feat1, feat2, ignore_mask, temperature=TEMPERATURE_INIT):
    """Pure-JAX reference mirroring the PyTorch forward (validation only)."""
    n = feat1.shape[0]
    temp = jnp.clip(jnp.asarray(temperature, jnp.float32), 0.001, 0.5)
    m = ignore_mask.astype(jnp.float32).reshape(n, 1)
    f2 = feat2 * (1.0 - m)
    logits = (feat1 @ f2.T) / temp
    targets = jnp.arange(n)

    def ls_ce(x):
        logp = jax.nn.log_softmax(x, axis=-1)
        nll = -logp[jnp.arange(n), targets]
        smooth = -logp.mean(-1)
        return CONFIDENCE * nll + SMOOTHING * smooth

    loss_vec = 0.5 * (ls_ce(logits) + ls_ce(logits.T))             # (N,)
    loss = jnp.mean(loss_vec * (1.0 - m))                          # (N,)*(N,1)->(N,N) quirk
    sel = (ignore_mask < 1.0).astype(jnp.float32)

    def acc(x):
        pred = jnp.argmax(x, axis=-1)
        corr = (pred == targets).astype(jnp.float32)
        return jnp.sum(corr * sel) / jnp.sum(sel)

    return loss, acc(logits), acc(logits.T)


if __name__ == "__main__":
    def run_case(n, d, dtype=jnp.float32, tile=None, rtol=1e-4, atol=1e-5):
        key = jax.random.PRNGKey(0)
        k1, k2 = jax.random.split(key)
        feat1 = jax.random.normal(k1, (n, d), jnp.float32)
        feat2 = jax.random.normal(k2, (n, d), jnp.float32)
        # L2-normalize like typical contrastive features (deterministic init).
        feat1 = feat1 / jnp.linalg.norm(feat1, axis=-1, keepdims=True)
        feat2 = feat2 / jnp.linalg.norm(feat2, axis=-1, keepdims=True)
        feat1 = feat1.astype(dtype)
        feat2 = feat2.astype(dtype)
        ignore_mask = jnp.zeros((n,), jnp.float32).at[3].set(1.0)

        out = nce_forward(feat1, feat2, ignore_mask, tile=tile)
        jax.block_until_ready(out)
        ref = nce_reference(feat1.astype(jnp.float32),
                            feat2.astype(jnp.float32), ignore_mask)
        for got, want in zip(out, ref):
            assert jnp.allclose(got, want, rtol=rtol, atol=atol), (got, want)

    run_case(8, 32)                   # tiny: single full-array tile
    run_case(256, 64)                 # auto tile (256): single-block fast path
    run_case(256, 64, tile=128)       # 2x2 grid: online softmax + partial sums
    run_case(256, 64, dtype=jnp.bfloat16, tile=128, rtol=5e-3, atol=1e-3)
    print("KERNEL_OK")
</pallas_src>

<mosaic_0001>
module attributes {stable_mosaic.version = 11 : i64} {
  func.func @nce_kernel(%arg0: i32, %arg1: i32, %arg2: memref<1xf32, #tpu.memory_space<smem>>, %arg3: memref<8x128xf32, #tpu.memory_space<vmem>>, %arg4: memref<8x128xf32, #tpu.memory_space<vmem>>, %arg5: memref<128x8xf32, #tpu.memory_space<vmem>>, %arg6: memref<128x8xf32, #tpu.memory_space<vmem>>, %arg7: memref<8x1xf32, #tpu.memory_space<vmem>>, %arg8: memref<8x128xf32, #tpu.memory_space<vmem>>, %arg9: memref<8x1xf32, #tpu.memory_space<vmem>>, %arg10: memref<8x1xf32, #tpu.memory_space<vmem>>, %arg11: memref<8x1xf32, #tpu.memory_space<vmem>>, %arg12: memref<8x1xf32, #tpu.memory_space<vmem>>, %arg13: memref<8x1xf32, #tpu.memory_space<vmem>>, %arg14: memref<8x1xf32, #tpu.memory_space<vmem>>, %arg15: memref<8x1xf32, #tpu.memory_space<vmem>>, %arg16: memref<8x1xf32, #tpu.memory_space<vmem>>) attributes {dimension_semantics = [#tpu.dimension_semantics<parallel>, #tpu.dimension_semantics<arbitrary>], iteration_bounds = array<i64: 1, 1>, scalar_prefetch = 0 : i64, scratch_operands = 8 : i64, tpu.core_type = #tpu.core_type<tc>, window_params = [{transform_indices = @transform_0, window_bounds = array<i64: 1>}, {transform_indices = @transform_1, window_bounds = array<i64: 8, 128>}, {transform_indices = @transform_2, window_bounds = array<i64: 8, 128>}, {transform_indices = @transform_3, window_bounds = array<i64: 128, 8>}, {transform_indices = @transform_4, window_bounds = array<i64: 128, 8>}, {transform_indices = @transform_5, window_bounds = array<i64: 8, 1>}, {transform_indices = @transform_6, window_bounds = array<i64: 8, 128>}]} {
    %c0 = arith.constant 0 : index
    %0 = memref.load %arg2[%c0] : memref<1xf32, #tpu.memory_space<smem>>
    %cst = arith.constant 1.000000e+00 : f32
    %1 = arith.divf %cst, %0 : f32
    %c0_i32 = arith.constant 0 : i32
    %2 = arith.cmpi eq, %arg1, %c0_i32 : i32
    %3 = arith.extui %2 : i1 to i32
    %c0_i32_0 = arith.constant 0 : i32
    %4 = arith.cmpi ne, %3, %c0_i32_0 : i32
    scf.if %4 {
      %cst_48 = arith.constant 0xFF800000 : f32
      %65 = vector.broadcast %cst_48 : f32 to vector<8x1xf32>
      %cst_49 = arith.constant 0.000000e+00 : f32
      %66 = vector.broadcast %cst_49 : f32 to vector<8x1xf32>
      %c0_50 = arith.constant 0 : index
      %c0_51 = arith.constant 0 : index
      %67 = vector.load %arg9[%c0_50, %c0_51] : memref<8x1xf32, #tpu.memory_space<vmem>>, vector<8x1xf32>
      tpu.vector_store %arg9[%c0_50, %c0_51], %65 {strides = array<i32>} : memref<8x1xf32, #tpu.memory_space<vmem>>, vector<8x1xf32>,
      %c0_52 = arith.constant 0 : index
      %c0_53 = arith.constant 0 : index
      %68 = vector.load %arg13[%c0_52, %c0_53] : memref<8x1xf32, #tpu.memory_space<vmem>>, vector<8x1xf32>
      tpu.vector_store %arg13[%c0_52, %c0_53], %65 {strides = array<i32>} : memref<8x1xf32, #tpu.memory_space<vmem>>, vector<8x1xf32>,
      %c0_54 = arith.constant 0 : index
      %c0_55 = arith.constant 0 : index
      %69 = vector.load %arg10[%c0_54, %c0_55] : memref<8x1xf32, #tpu.memory_space<vmem>>, vector<8x1xf32>
      tpu.vector_store %arg10[%c0_54, %c0_55], %66 {strides = array<i32>} : memref<8x1xf32, #tpu.memory_space<vmem>>, vector<8x1xf32>,
      %c0_56 = arith.constant 0 : index
      %c0_57 = arith.constant 0 : index
      %70 = vector.load %arg14[%c0_56, %c0_57] : memref<8x1xf32, #tpu.memory_space<vmem>>, vector<8x1xf32>
      tpu.vector_store %arg14[%c0_56, %c0_57], %66 {strides = array<i32>} : memref<8x1xf32, #tpu.memory_space<vmem>>, vector<8x1xf32>,
      %c0_58 = arith.constant 0 : index
      %c0_59 = arith.constant 0 : index
      %71 = vector.load %arg11[%c0_58, %c0_59] : memref<8x1xf32, #tpu.memory_space<vmem>>, vector<8x1xf32>
      tpu.vector_store %arg11[%c0_58, %c0_59], %66 {strides = array<i32>} : memref<8x1xf32, #tpu.memory_space<vmem>>, vector<8x1xf32>,
      %c0_60 = arith.constant 0 : index
      %c0_61 = arith.constant 0 : index
      %72 = vector.load %arg15[%c0_60, %c0_61] : memref<8x1xf32, #tpu.memory_space<vmem>>, vector<8x1xf32>
      tpu.vector_store %arg15[%c0_60, %c0_61], %66 {strides = array<i32>} : memref<8x1xf32, #tpu.memory_space<vmem>>, vector<8x1xf32>,
    } else {
    }
    %c0_1 = arith.constant 0 : index
    %c0_2 = arith.constant 0 : index
    %5 = vector.load %arg3[%c0_1, %c0_2] : memref<8x128xf32, #tpu.memory_space<vmem>>, vector<8x128xf32>
    %c0_3 = arith.constant 0 : index
    %c0_4 = arith.constant 0 : index
    %6 = vector.load %arg6[%c0_3, %c0_4] : memref<128x8xf32, #tpu.memory_space<vmem>>, vector<128x8xf32>
    %cst_5 = arith.constant dense<0.000000e+00> : vector<8x8xf32>
    %7 = tpu.matmul %5, %6, %cst_5 {dimension_numbers = #tpu.dot_dimension_numbers<[1], [0], [0], [1], [0, 0, 1, 1], [], []>} : vector<8x128xf32>, vector<128x8xf32>, vector<8x8xf32> -> vector<8x8xf32>
    %8 = vector.broadcast %1 : f32 to vector<8x8xf32>
    %9 = arith.mulf %7, %8 : vector<8x8xf32>
    %c0_6 = arith.constant 0 : index
    %c0_7 = arith.constant 0 : index
    %10 = vector.load %arg4[%c0_6, %c0_7] : memref<8x128xf32, #tpu.memory_space<vmem>>, vector<8x128xf32>
    %c0_8 = arith.constant 0 : index
    %c0_9 = arith.constant 0 : index
    %11 = vector.load %arg5[%c0_8, %c0_9] : memref<128x8xf32, #tpu.memory_space<vmem>>, vector<128x8xf32>
    %cst_10 = arith.constant dense<0.000000e+00> : vector<8x8xf32>
    %12 = tpu.matmul %10, %11, %cst_10 {dimension_numbers = #tpu.dot_dimension_numbers<[1], [0], [0], [1], [0, 0, 1, 1], [], []>} : vector<8x128xf32>, vector<128x8xf32>, vector<8x8xf32> -> vector<8x8xf32>
    %13 = vector.broadcast %1 : f32 to vector<8x8xf32>
    %14 = arith.mulf %12, %13 : vector<8x8xf32>
    %15 = arith.cmpi eq, %arg1, %arg0 : i32
    %16 = arith.extui %15 : i1 to i32
    %c0_i32_11 = arith.constant 0 : i32
    %17 = arith.cmpi ne, %16, %c0_i32_11 : i32
    scf.if %17 {
      %65 = tpu.iota {dimensions = array<i32: 1>} : vector<8x8xi32>
      %66 = tpu.iota {dimensions = array<i32: 0>} : vector<8x8xi32>
      %67 = arith.cmpi eq, %65, %66 : vector<8x8xi32>
      %cst_48 = arith.constant 0.000000e+00 : f32
      %68 = vector.broadcast %cst_48 : f32 to vector<8x8xf32>
      %69 = arith.select %67, %9, %68 : vector<8x8xi1>, vector<8x8xf32>
      %cst_49 = arith.constant dense<0.000000e+00> : vector<8xf32>
      %70 = vector.multi_reduction <add>, %69, %cst_49 [1] : vector<8x8xf32> to vector<8xf32>
      %71 = vector.shape_cast %70 : vector<8xf32> to vector<8x1xf32>
      %c0_50 = arith.constant 0 : index
      %c0_51 = arith.constant 0 : index
      %72 = vector.load %arg12[%c0_50, %c0_51] : memref<8x1xf32, #tpu.memory_space<vmem>>, vector<8x1xf32>
      tpu.vector_store %arg12[%c0_50, %c0_51], %71 {strides = array<i32>} : memref<8x1xf32, #tpu.memory_space<vmem>>, vector<8x1xf32>,
      %cst_52 = arith.constant 0.000000e+00 : f32
      %73 = vector.broadcast %cst_52 : f32 to vector<8x8xf32>
      %74 = arith.select %67, %14, %73 : vector<8x8xi1>, vector<8x8xf32>
      %cst_53 = arith.constant dense<0.000000e+00> : vector<8xf32>
      %75 = vector.multi_reduction <add>, %74, %cst_53 [1] : vector<8x8xf32> to vector<8xf32>
      %76 = vector.shape_cast %75 : vector<8xf32> to vector<8x1xf32>
      %c0_54 = arith.constant 0 : index
      %c0_55 = arith.constant 0 : index
      %77 = vector.load %arg16[%c0_54, %c0_55] : memref<8x1xf32, #tpu.memory_space<vmem>>, vector<8x1xf32>
      tpu.vector_store %arg16[%c0_54, %c0_55], %76 {strides = array<i32>} : memref<8x1xf32, #tpu.memory_space<vmem>>, vector<8x1xf32>,
    } else {
    }
    %cst_12 = arith.constant dense<0xFF800000> : vector<8xf32>
    %18 = vector.multi_reduction <maximumf>, %9, %cst_12 [1] : vector<8x8xf32> to vector<8xf32>
    %19 = vector.shape_cast %18 : vector<8xf32> to vector<8x1xf32>
    %c0_13 = arith.constant 0 : index
    %c0_14 = arith.constant 0 : index
    %20 = vector.load %arg9[%c0_13, %c0_14] : memref<8x1xf32, #tpu.memory_space<vmem>>, vector<8x1xf32>
    %21 = arith.maximumf %20, %19 : vector<8x1xf32>
    %c0_15 = arith.constant 0 : index
    %c0_16 = arith.constant 0 : index
    %22 = vector.load %arg9[%c0_15, %c0_16] : memref<8x1xf32, #tpu.memory_space<vmem>>, vector<8x1xf32>
    %23 = arith.subf %22, %21 : vector<8x1xf32>
    %24 = math.exp %23 : vector<8x1xf32>
    %c0_17 = arith.constant 0 : index
    %c0_18 = arith.constant 0 : index
    %25 = vector.load %arg10[%c0_17, %c0_18] : memref<8x1xf32, #tpu.memory_space<vmem>>, vector<8x1xf32>
    %26 = arith.mulf %24, %25 : vector<8x1xf32>
    %27 = vector.broadcast %21 : vector<8x1xf32> to vector<8x8xf32>
    %28 = arith.subf %9, %27 : vector<8x8xf32>
    %29 = math.exp %28 : vector<8x8xf32>
    %cst_19 = arith.constant dense<0.000000e+00> : vector<8xf32>
    %30 = vector.multi_reduction <add>, %29, %cst_19 [1] : vector<8x8xf32> to vector<8xf32>
    %31 = vector.shape_cast %30 : vector<8xf32> to vector<8x1xf32>
    %32 = arith.addf %26, %31 : vector<8x1xf32>
    %c0_20 = arith.constant 0 : index
    %c0_21 = arith.constant 0 : index
    %33 = vector.load %arg10[%c0_20, %c0_21] : memref<8x1xf32, #tpu.memory_space<vmem>>, vector<8x1xf32>
    tpu.vector_store %arg10[%c0_20, %c0_21], %32 {strides = array<i32>} : memref<8x1xf32, #tpu.memory_space<vmem>>, vector<8x1xf32>,
    %c0_22 = arith.constant 0 : index
    %c0_23 = arith.constant 0 : index
    %34 = vector.load %arg11[%c0_22, %c0_23] : memref<8x1xf32, #tpu.memory_space<vmem>>, vector<8x1xf32>
    %cst_24 = arith.constant dense<0.000000e+00> : vector<8xf32>
    %35 = vector.multi_reduction <add>, %9, %cst_24 [1] : vector<8x8xf32> to vector<8xf32>
    %36 = vector.shape_cast %35 : vector<8xf32> to vector<8x1xf32>
    %37 = arith.addf %34, %36 : vector<8x1xf32>
    %c0_25 = arith.constant 0 : index
    %c0_26 = arith.constant 0 : index
    %38 = vector.load %arg11[%c0_25, %c0_26] : memref<8x1xf32, #tpu.memory_space<vmem>>, vector<8x1xf32>
    tpu.vector_store %arg11[%c0_25, %c0_26], %37 {strides = array<i32>} : memref<8x1xf32, #tpu.memory_space<vmem>>, vector<8x1xf32>,
    %c0_27 = arith.constant 0 : index
    %c0_28 = arith.constant 0 : index
    %39 = vector.load %arg9[%c0_27, %c0_28] : memref<8x1xf32, #tpu.memory_space<vmem>>, vector<8x1xf32>
    tpu.vector_store %arg9[%c0_27, %c0_28], %21 {strides = array<i32>} : memref<8x1xf32, #tpu.memory_space<vmem>>, vector<8x1xf32>,
    %cst_29 = arith.constant dense<0xFF800000> : vector<8xf32>
    %40 = vector.multi_reduction <maximumf>, %14, %cst_29 [1] : vector<8x8xf32> to vector<8xf32>
    %41 = vector.shape_cast %40 : vector<8xf32> to vector<8x1xf32>
    %c0_30 = arith.constant 0 : index
    %c0_31 = arith.constant 0 : index
    %42 = vector.load %arg13[%c0_30, %c0_31] : memref<8x1xf32, #tpu.memory_space<vmem>>, vector<8x1xf32>
    %43 = arith.maximumf %42, %41 : vector<8x1xf32>
    %c0_32 = arith.constant 0 : index
    %c0_33 = arith.constant 0 : index
    %44 = vector.load %arg13[%c0_32, %c0_33] : memref<8x1xf32, #tpu.memory_space<vmem>>, vector<8x1xf32>
    %45 = arith.subf %44, %43 : vector<8x1xf32>
    %46 = math.exp %45 : vector<8x1xf32>
    %c0_34 = arith.constant 0 : index
    %c0_35 = arith.constant 0 : index
    %47 = vector.load %arg14[%c0_34, %c0_35] : memref<8x1xf32, #tpu.memory_space<vmem>>, vector<8x1xf32>
    %48 = arith.mulf %46, %47 : vector<8x1xf32>
    %49 = vector.broadcast %43 : vector<8x1xf32> to vector<8x8xf32>
    %50 = arith.subf %14, %49 : vector<8x8xf32>
    %51 = math.exp %50 : vector<8x8xf32>
    %cst_36 = arith.constant dense<0.000000e+00> : vector<8xf32>
    %52 = vector.multi_reduction <add>, %51, %cst_36 [1] : vector<8x8xf32> to vector<8xf32>
    %53 = vector.shape_cast %52 : vector<8xf32> to vector<8x1xf32>
    %54 = arith.addf %48, %53 : vector<8x1xf32>
    %c0_37 = arith.constant 0 : index
    %c0_38 = arith.constant 0 : index
    %55 = vector.load %arg14[%c0_37, %c0_38] : memref<8x1xf32, #tpu.memory_space<vmem>>, vector<8x1xf32>
    tpu.vector_store %arg14[%c0_37, %c0_38], %54 {strides = array<i32>} : memref<8x1xf32, #tpu.memory_space<vmem>>, vector<8x1xf32>,
    %c0_39 = arith.constant 0 : index
    %c0_40 = arith.constant 0 : index
    %56 = vector.load %arg15[%c0_39, %c0_40] : memref<8x1xf32, #tpu.memory_space<vmem>>, vector<8x1xf32>
    %cst_41 = arith.constant dense<0.000000e+00> : vector<8xf32>
    %57 = vector.multi_reduction <add>, %14, %cst_41 [1] : vector<8x8xf32> to vector<8xf32>
    %58 = vector.shape_cast %57 : vector<8xf32> to vector<8x1xf32>
    %59 = arith.addf %56, %58 : vector<8x1xf32>
    %c0_42 = arith.constant 0 : index
    %c0_43 = arith.constant 0 : index
    %60 = vector.load %arg15[%c0_42, %c0_43] : memref<8x1xf32, #tpu.memory_space<vmem>>, vector<8x1xf32>
    tpu.vector_store %arg15[%c0_42, %c0_43], %59 {strides = array<i32>} : memref<8x1xf32, #tpu.memory_space<vmem>>, vector<8x1xf32>,
    %c0_44 = arith.constant 0 : index
    %c0_45 = arith.constant 0 : index
    %61 = vector.load %arg13[%c0_44, %c0_45] : memref<8x1xf32, #tpu.memory_space<vmem>>, vector<8x1xf32>
    tpu.vector_store %arg13[%c0_44, %c0_45], %43 {strides = array<i32>} : memref<8x1xf32, #tpu.memory_space<vmem>>, vector<8x1xf32>,
    %c0_i32_46 = arith.constant 0 : i32
    %62 = arith.cmpi eq, %arg1, %c0_i32_46 : i32
    %63 = arith.extui %62 : i1 to i32
    %c0_i32_47 = arith.constant 0 : i32
    %64 = arith.cmpi ne, %63, %c0_i32_47 : i32
    scf.if %64 {
      %c0_48 = arith.constant 0 : index
      %c0_49 = arith.constant 0 : index
      %65 = vector.load %arg7[%c0_48, %c0_49] : memref<8x1xf32, #tpu.memory_space<vmem>>, vector<8x1xf32>
      %c0_50 = arith.constant 0 : index
      %c0_51 = arith.constant 0 : index
      %66 = vector.load %arg9[%c0_50, %c0_51] : memref<8x1xf32, #tpu.memory_space<vmem>>, vector<8x1xf32>
      %c0_52 = arith.constant 0 : index
      %c0_53 = arith.constant 0 : index
      %67 = vector.load %arg10[%c0_52, %c0_53] : memref<8x1xf32, #tpu.memory_space<vmem>>, vector<8x1xf32>
      %68 = math.log %67 : vector<8x1xf32>
      %69 = arith.addf %66, %68 : vector<8x1xf32>
      %c0_54 = arith.constant 0 : index
      %c0_55 = arith.constant 0 : index
      %70 = vector.load %arg12[%c0_54, %c0_55] : memref<8x1xf32, #tpu.memory_space<vmem>>, vector<8x1xf32>
      %71 = arith.subf %69, %70 : vector<8x1xf32>
      %c0_56 = arith.constant 0 : index
      %c0_57 = arith.constant 0 : index
      %72 = vector.load %arg11[%c0_56, %c0_57] : memref<8x1xf32, #tpu.memory_space<vmem>>, vector<8x1xf32>
      %cst_58 = arith.constant 1.250000e-01 : f32
      %73 = vector.broadcast %cst_58 : f32 to vector<8x1xf32>
      %74 = arith.mulf %72, %73 : vector<8x1xf32>
      %75 = arith.subf %69, %74 : vector<8x1xf32>
      %cst_59 = arith.constant 0.899999976 : f32
      %76 = vector.broadcast %cst_59 : f32 to vector<8x1xf32>
      %77 = arith.mulf %76, %71 : vector<8x1xf32>
      %cst_60 = arith.constant 1.000000e-01 : f32
      %78 = vector.broadcast %cst_60 : f32 to vector<8x1xf32>
      %79 = arith.mulf %78, %75 : vector<8x1xf32>
      %80 = arith.addf %77, %79 : vector<8x1xf32>
      %c0_61 = arith.constant 0 : index
      %c0_62 = arith.constant 0 : index
      %81 = vector.load %arg12[%c0_61, %c0_62] : memref<8x1xf32, #tpu.memory_space<vmem>>, vector<8x1xf32>
      %c0_63 = arith.constant 0 : index
      %c0_64 = arith.constant 0 : index
      %82 = vector.load %arg9[%c0_63, %c0_64] : memref<8x1xf32, #tpu.memory_space<vmem>>, vector<8x1xf32>
      %83 = arith.cmpf oge, %81, %82 : vector<8x1xf32>
      %84 = arith.extui %83 : vector<8x1xi1> to vector<8x1xi32>
      %85 = arith.sitofp %84 : vector<8x1xi32> to vector<8x1xf32>
      %c0_65 = arith.constant 0 : index
      %c0_66 = arith.constant 0 : index
      %86 = vector.load %arg13[%c0_65, %c0_66] : memref<8x1xf32, #tpu.memory_space<vmem>>, vector<8x1xf32>
      %c0_67 = arith.constant 0 : index
      %c0_68 = arith.constant 0 : index
      %87 = vector.load %arg14[%c0_67, %c0_68] : memref<8x1xf32, #tpu.memory_space<vmem>>, vector<8x1xf32>
      %88 = math.log %87 : vector<8x1xf32>
      %89 = arith.addf %86, %88 : vector<8x1xf32>
      %c0_69 = arith.constant 0 : index
      %c0_70 = arith.constant 0 : index
      %90 = vector.load %arg16[%c0_69, %c0_70] : memref<8x1xf32, #tpu.memory_space<vmem>>, vector<8x1xf32>
      %91 = arith.subf %89, %90 : vector<8x1xf32>
      %c0_71 = arith.constant 0 : index
      %c0_72 = arith.constant 0 : index
      %92 = vector.load %arg15[%c0_71, %c0_72] : memref<8x1xf32, #tpu.memory_space<vmem>>, vector<8x1xf32>
      %cst_73 = arith.constant 1.250000e-01 : f32
      %93 = vector.broadcast %cst_73 : f32 to vector<8x1xf32>
      %94 = arith.mulf %92, %93 : vector<8x1xf32>
      %95 = arith.subf %89, %94 : vector<8x1xf32>
      %cst_74 = arith.constant 0.899999976 : f32
      %96 = vector.broadcast %cst_74 : f32 to vector<8x1xf32>
      %97 = arith.mulf %96, %91 : vector<8x1xf32>
      %cst_75 = arith.constant 1.000000e-01 : f32
      %98 = vector.broadcast %cst_75 : f32 to vector<8x1xf32>
      %99 = arith.mulf %98, %95 : vector<8x1xf32>
      %100 = arith.addf %97, %99 : vector<8x1xf32>
      %c0_76 = arith.constant 0 : index
      %c0_77 = arith.constant 0 : index
      %101 = vector.load %arg16[%c0_76, %c0_77] : memref<8x1xf32, #tpu.memory_space<vmem>>, vector<8x1xf32>
      %c0_78 = arith.constant 0 : index
      %c0_79 = arith.constant 0 : index
      %102 = vector.load %arg13[%c0_78, %c0_79] : memref<8x1xf32, #tpu.memory_space<vmem>>, vector<8x1xf32>
      %103 = arith.cmpf oge, %101, %102 : vector<8x1xf32>
      %104 = arith.extui %103 : vector<8x1xi1> to vector<8x1xi32>
      %105 = arith.sitofp %104 : vector<8x1xi32> to vector<8x1xf32>
      %106 = arith.addf %80, %100 : vector<8x1xf32>
      %cst_80 = arith.constant 5.000000e-01 : f32
      %107 = vector.broadcast %cst_80 : f32 to vector<8x1xf32>
      %108 = arith.mulf %107, %106 : vector<8x1xf32>
      %109 = vector.shape_cast %108 : vector<8x1xf32> to vector<1x8x1xf32>
      %cst_81 = arith.constant dense<0.000000e+00> : vector<1xf32>
      %110 = vector.multi_reduction <add>, %109, %cst_81 [1, 2] : vector<1x8x1xf32> to vector<1xf32>
      %111 = vector.shape_cast %110 : vector<1xf32> to vector<1x1x1xf32>
      %112 = vector.extract %111[0, 0, 0] : f32 from vector<1x1x1xf32>
      %113 = arith.mulf %85, %65 : vector<8x1xf32>
      %114 = vector.shape_cast %113 : vector<8x1xf32> to vector<1x8x1xf32>
      %cst_82 = arith.constant dense<0.000000e+00> : vector<1xf32>
      %115 = vector.multi_reduction <add>, %114, %cst_82 [1, 2] : vector<1x8x1xf32> to vector<1xf32>
      %116 = vector.shape_cast %115 : vector<1xf32> to vector<1x1x1xf32>
      %117 = vector.extract %116[0, 0, 0] : f32 from vector<1x1x1xf32>
      %118 = arith.mulf %105, %65 : vector<8x1xf32>
      %119 = vector.shape_cast %118 : vector<8x1xf32> to vector<1x8x1xf32>
      %cst_83 = arith.constant dense<0.000000e+00> : vector<1xf32>
      %120 = vector.multi_reduction <add>, %119, %cst_83 [1, 2] : vector<1x8x1xf32> to vector<1xf32>
      %121 = vector.shape_cast %120 : vector<1xf32> to vector<1x1x1xf32>
      %122 = vector.extract %121[0, 0, 0] : f32 from vector<1x1x1xf32>
      %123 = tpu.iota {dimensions = array<i32: 0>} : vector<8x128xi32>
      %124 = tpu.iota {dimensions = array<i32: 1>} : vector<8x128xi32>
      %c0_i32_84 = arith.constant 0 : i32
      %125 = vector.broadcast %c0_i32_84 : i32 to vector<8x128xi32>
      %126 = arith.cmpi eq, %123, %125 : vector<8x128xi32>
      %c0_i32_85 = arith.constant 0 : i32
      %127 = vector.broadcast %c0_i32_85 : i32 to vector<8x128xi32>
      %128 = arith.cmpi eq, %124, %127 : vector<8x128xi32>
      %129 = arith.andi %126, %128 : vector<8x128xi1>
      %c1_i32 = arith.constant 1 : i32
      %130 = vector.broadcast %c1_i32 : i32 to vector<8x128xi32>
      %131 = arith.cmpi eq, %124, %130 : vector<8x128xi32>
      %132 = arith.andi %126, %131 : vector<8x128xi1>
      %c2_i32 = arith.constant 2 : i32
      %133 = vector.broadcast %c2_i32 : i32 to vector<8x128xi32>
      %134 = arith.cmpi eq, %124, %133 : vector<8x128xi32>
      %135 = arith.andi %126, %134 : vector<8x128xi1>
      %cst_86 = arith.constant 0.000000e+00 : f32
      %136 = vector.broadcast %122 : f32 to vector<8x128xf32>
      %137 = vector.broadcast %cst_86 : f32 to vector<8x128xf32>
      %138 = arith.select %135, %136, %137 : vector<8x128xi1>, vector<8x128xf32>
      %139 = vector.broadcast %117 : f32 to vector<8x128xf32>
      %140 = arith.select %132, %139, %138 : vector<8x128xi1>, vector<8x128xf32>
      %141 = vector.broadcast %112 : f32 to vector<8x128xf32>
      %142 = arith.select %129, %141, %140 : vector<8x128xi1>, vector<8x128xf32>
      %c0_87 = arith.constant 0 : index
      %c0_88 = arith.constant 0 : index
      %143 = vector.load %arg8[%c0_87, %c0_88] : memref<8x128xf32, #tpu.memory_space<vmem>>, vector<8x128xf32>
      tpu.vector_store %arg8[%c0_87, %c0_88], %142 {strides = array<i32>} : memref<8x128xf32, #tpu.memory_space<vmem>>, vector<8x128xf32>,
    } else {
    }
    return
  }
  func.func @transform_0(%arg0: i32, %arg1: i32) -> i32 {
    %c0_i32 = arith.constant 0 : i32
    %c0_i32_0 = arith.constant 0 : i32
    return %c0_i32 : i32
  }
  func.func @transform_1(%arg0: i32, %arg1: i32) -> (i32, i32) {
    %c0_i32 = arith.constant 0 : i32
    %c0_i32_0 = arith.constant 0 : i32
    return %arg0, %c0_i32 : i32, i32
  }
  func.func @transform_2(%arg0: i32, %arg1: i32) -> (i32, i32) {
    %c0_i32 = arith.constant 0 : i32
    %c0_i32_0 = arith.constant 0 : i32
    return %arg0, %c0_i32 : i32, i32
  }
  func.func @transform_3(%arg0: i32, %arg1: i32) -> (i32, i32) {
    %c0_i32 = arith.constant 0 : i32
    %c0_i32_0 = arith.constant 0 : i32
    return %c0_i32, %arg1 : i32, i32
  }
  func.func @transform_4(%arg0: i32, %arg1: i32) -> (i32, i32) {
    %c0_i32 = arith.constant 0 : i32
    %c0_i32_0 = arith.constant 0 : i32
    return %c0_i32, %arg1 : i32, i32
  }
  func.func @transform_5(%arg0: i32, %arg1: i32) -> (i32, i32) {
    %c0_i32 = arith.constant 0 : i32
    %c0_i32_0 = arith.constant 0 : i32
    return %arg0, %c0_i32 : i32, i32
  }
  func.func @transform_6(%arg0: i32, %arg1: i32) -> (i32, i32) {
    %c0_i32 = arith.constant 0 : i32
    %c0_i32_0 = arith.constant 0 : i32
    return %c0_i32, %arg0 : i32, i32
  }
}

</mosaic_0001>

<bundles_post_ra>
// kernel: tpu_custom_call.1
= control target key start
LH: loop header
LB: loop body
LE: loop exit
PB: predicated region body
PF: predicated region fallthrough
CT: control target
= control target key end

     0   :  { %v559_v3 = vmov 0.0   ;;  %s785_s0 = inlined_call_operand.<no memory space> [shape: f32[1], index: 0, kind: input, shape index: {}]   ;;  %s786_s1 = inlined_call_operand.vmem [shape: f32[8,128], index: 1, kind: input, shape index: {}]   ;;  %s787_s2 = inlined_call_operand.vmem [shape: f32[8,128], index: 2, kind: input, shape index: {}]   ;;  %s788_s3 = inlined_call_operand.vmem [shape: f32[128,8], index: 3, kind: input, shape index: {}]   ;;  %s789_s4 = inlined_call_operand.vmem [shape: f32[128,8], index: 4, kind: input, shape index: {}]   ;;  %s790_s5 = inlined_call_operand.vmem [shape: f32[8,1], index: 5, kind: input, shape index: {}]   ;;  %s791_s6 = inlined_call_operand.hbm [shape: f32[8,128], index: 6, kind: output, shape index: {}]  }
   0x1   :  { %v56_v0 = vld [vmem:[%s789_s4 + $0x78] sm:$0xff]  ;;  %v26_v2 = vstv %s785_s0  ;;  %438 = vmatprep.subr.mxu0 %v559_v3  ;;  %473 = vmatprep.subr.mxu1 %v559_v3  ;;  %v55_v4 = vld [vmem:[%s789_s4 + $0x70] sm:$0xff]  ;;  %v54_v6 = vld [vmem:[%s789_s4 + $0x68] sm:$0xff] }
   0x2   :  { %v145_v1 = vld [vmem:[%s788_s3 + $0x78] sm:$0xff]  ;;  %v144_v5 = vld [vmem:[%s788_s3 + $0x70] sm:$0xff]  ;;  %523 = vrcp.f32 %v26_v2  ;;  %439 = vmatpush3.msra.mxu0 %v56_v0  ;;  %v143_v7 = vld [vmem:[%s788_s3 + $0x68] sm:$0xff] }
   0x3   :  { %474 = vmatpush3.msra.mxu1 %v145_v1  ;;  %440 = vmatprep.subr.mxu0 %v559_v3  ;;  %v53_v8 = vld [vmem:[%s789_s4 + $0x60] sm:$0xff]  ;;  %v52_v10 = vld [vmem:[%s789_s4 + $0x58] sm:$0xff]  ;;  %v51_v12 = vld [vmem:[%s789_s4 + $0x50] sm:$0xff] }
   0x4   :  { %475 = vmatprep.subr.mxu1 %v559_v3  ;;  %441 = vmatpush3.msra.mxu0 %v55_v4  ;;  %v142_v9 = vld [vmem:[%s788_s3 + $0x60] sm:$0xff]  ;;  %v141_v11 = vld [vmem:[%s788_s3 + $0x58] sm:$0xff]  ;;  %v140_v13 = vld [vmem:[%s788_s3 + $0x50] sm:$0xff] }
   0x5   :  { %476 = vmatpush3.msra.mxu1 %v144_v5  ;;  %442 = vmatprep.subr.mxu0 %v559_v3  ;;  %v50_v14 = vld [vmem:[%s789_s4 + $0x48] sm:$0xff] }
   0x6   :  { %477 = vmatprep.subr.mxu1 %v559_v3  ;;  %443 = vmatpush3.msra.mxu0 %v54_v6  ;;  %v139_v15 = vld [vmem:[%s788_s3 + $0x48] sm:$0xff] }
   0x7   :  { %478 = vmatpush3.msra.mxu1 %v143_v7  ;;  %444 = vmatprep.subr.mxu0 %v559_v3 }
   0x8   :  { %479 = vmatprep.subr.mxu1 %v559_v3  ;;  %445 = vmatpush3.msra.mxu0 %v53_v8 }
   0x9   :  { %480 = vmatpush3.msra.mxu1 %v142_v9  ;;  %446 = vmatprep.subr.mxu0 %v559_v3 }
   0xa   :  { %481 = vmatprep.subr.mxu1 %v559_v3  ;;  %447 = vmatpush3.msra.mxu0 %v52_v10 }
   0xb   :  { %482 = vmatpush3.msra.mxu1 %v141_v11  ;;  %448 = vmatprep.subr.mxu0 %v559_v3 }
   0xc   :  { %483 = vmatprep.subr.mxu1 %v559_v3 }
   0xd   :  { %12 = vsyncpa [#allocation12], 0  ;;  %449 = vmatpush3.msra.mxu0 %v51_v12  ;;  %484 = vmatpush3.msra.mxu1 %v140_v13  ;;  %v49_v16 = vld [vmem:[%s789_s4 + $0x40] sm:$0xff]  ;;  %v48_v19 = vld [vmem:[%s789_s4 + $0x38] sm:$0xff]  ;;  %vm560_vm0 = vmmov 0   ;;  %vm33_vm1 = vcmask 7168   ;;  %v221_v62 = vlaneseq }
   0xe   :  { %450 = vmatprep.subr.mxu0 %v559_v3  ;;  %485 = vmatprep.subr.mxu1 %v559_v3  ;;  %v138_v17 = vld [vmem:[%s788_s3 + $0x40] sm:$0xff]  ;;  %v137_v20 = vld [vmem:[%s788_s3 + $0x38] sm:$0xff]  ;;  %v47_v21 = vld [vmem:[%s789_s4 + $0x30] sm:$0xff]  ;;  %v561_v37 = vmov -inf   ;;  %36 = vst.msk [vmem:[#allocation3] sm:$0xff] %vm33_vm1, %v559_v3  ;;  %vm227_vm2 = vcmask 64512  }
   0xf   :  { %v524_v18 = vpop.eup %523  ;;  %451 = vmatpush3.msra.mxu0 %v50_v14  ;;  %486 = vmatpush3.msra.mxu1 %v139_v15  ;;  %v136_v22 = vld [vmem:[%s788_s3 + $0x30] sm:$0xff]  ;;  %v46_v23 = vld [vmem:[%s789_s4 + $0x28] sm:$0xff]  ;;  %v45_v25 = vld [vmem:[%s789_s4 + $0x20] sm:$0xff]  ;;  %34 = vst.msk [vmem:[#allocation2] sm:$0xff] %vm33_vm1, %v561_v37  ;;  %v562_v47 = vmov 0   ;;  %v753_v1 = vand.u32 127, %v221_v62 }
  0x10   :  { %452 = vmatprep.subr.mxu0 %v559_v3  ;;  %487 = vmatprep.subr.mxu1 %v559_v3  ;;  %508 = vpush %v524_v18  ;;  %v135_v24 = vld [vmem:[%s788_s3 + $0x28] sm:$0xff]  ;;  %v134_v26 = vld [vmem:[%s788_s3 + $0x20] sm:$0xff]  ;;  %v44_v27 = vld [vmem:[%s789_s4 + $0x18] sm:$0xff]  ;;  %v755_v2 = vshrl.u32 %v221_v62, 7  ;;  %s563_s17 = smov [#allocation11]  }
  0x11   :  { %453 = vmatpush3.msra.mxu0 %v49_v16  ;;  %488 = vmatpush3.msra.mxu1 %v138_v17  ;;  %v133_v28 = vld [vmem:[%s788_s3 + $0x18] sm:$0xff]  ;;  %v43_v29 = vld [vmem:[%s789_s4 + $0x10] sm:$0xff]  ;;  %v42_v31 = vld [vmem:[%s789_s4 + $0x8] sm:$0xff]  ;;  %35 = vst.msk [vmem:[#allocation6] sm:$0xff] %vm33_vm1, %v561_v37  ;;  %vm379_vm7 = vcmp.eq.s32.totalorder %v753_v1, 2  ;;  %vm377_vm8 = vcmp.eq.s32.totalorder %v753_v1, 1 }
  0x12   :  { %454 = vmatprep.subr.mxu0 %v559_v3  ;;  %489 = vmatprep.subr.mxu1 %v559_v3  ;;  %v132_v30 = vld [vmem:[%s788_s3 + $0x10] sm:$0xff]  ;;  %v131_v32 = vld [vmem:[%s788_s3 + $0x8] sm:$0xff]  ;;  %v41_v33 = vld [vmem:[%s789_s4] sm:$0xff]  ;;  %37 = vst.msk [vmem:[#allocation7] sm:$0xff] %vm33_vm1, %v559_v3  ;;  %vm225_vm3 = vcmp.eq.s32.totalorder %v753_v1, %v755_v2  ;;  %vm374_vm6 = vcmp.eq.s32.totalorder %v755_v2, 0  ;;  %vm375_vm9 = vcmp.eq.s32.totalorder %v753_v1, 0 }
  0x13   :  { %455 = vmatpush3.msra.mxu0 %v48_v19  ;;  %490 = vmatpush3.msra.mxu1 %v137_v20  ;;  %v130_v34 = vld [vmem:[%s788_s3] sm:$0xff]  ;;  %38 = vst.msk [vmem:[#allocation4] sm:$0xff] %vm33_vm1, %v559_v3  ;;  %39 = vst.msk [vmem:[#allocation8] sm:$0xff] %vm33_vm1, %v559_v3  ;;  %s394_s18 = sshll.u32 %s563_s17, 4  ;;  %s395_s18 = int_to_ptr.vmem [resolvable:$true] %s394_s18 }
  0x14   :  { %456 = vmatprep.subr.mxu0 %v559_v3  ;;  %491 = vmatprep.subr.mxu1 %v559_v3  ;;  %v40_v35 = vld [vmem:[%s786_s1] sm:$0xff]  ;;  %vm380_vm10 = vmand %vm374_vm6, %vm379_vm7  ;;  %s537_s19 = scalar_lea.vmem %s395_s18, 128  ;;  %p542_p1 = scmp.lt.s32.totalorder %s395_s18, %s395_s18 }
  0x15   :  { %457 = vmatpush3.msra.mxu0 %v47_v21  ;;  %492 = vmatpush3.msra.mxu1 %v136_v22  ;;  %v129_v36 = vld [vmem:[%s787_s2] sm:$0xff]  ;;  %v247_v15 = vld [vmem:[#allocation3] sm:$0xff]  ;;  %vm378_vm11 = vmand %vm374_vm6, %vm377_vm8  ;;  %p538_p0 = scmp.ne.s32.totalorder %s395_s18, %s537_s19  ;;  %p543_p2 = scmp.lt.s32.totalorder %s537_s19, %s537_s19 }
  0x16   :  { %458 = vmatprep.subr.mxu0 %v559_v3  ;;  %493 = vmatprep.subr.mxu1 %v559_v3  ;;  %v242_v48 = vld [vmem:[#allocation2] sm:$0xff]  ;;  %vm376_vm12 = vmand %vm374_vm6, %vm375_vm9 }
  0x17   :  { %459 = vmatpush3.msra.mxu0 %v46_v23  ;;  %494 = vmatpush3.msra.mxu1 %v135_v24  ;;  %p544_p3 = por %p543_p2, %p542_p1 }
  0x18   :  { %460 = vmatprep.subr.mxu0 %v559_v3  ;;  %495 = vmatprep.subr.mxu1 %v559_v3  ;;  %v273_v51 = vld [vmem:[#allocation6] sm:$0xff] }
  0x19   :  { %461 = vmatpush3.msra.mxu0 %v45_v25  ;;  %496 = vmatpush3.msra.mxu1 %v134_v26  ;;  %v278_v19 = vld [vmem:[#allocation7] sm:$0xff]  ;;  %p545_p4 = pnand %p544_p3, %p538_p0 }
  0x1a   :  { %462 = vmatprep.subr.mxu0 %v559_v3  ;;  %497 = vmatprep.subr.mxu1 %v559_v3  ;;  %v263_v21 = vld [vmem:[#allocation4] sm:$0xff] }
  0x1b   :  { %463 = vmatpush3.msra.mxu0 %v44_v27  ;;  %498 = vmatpush3.msra.mxu1 %v133_v28  ;;  %v293_v27 = vld [vmem:[#allocation8] sm:$0xff] }
  0x1c   :  { %464 = vmatprep.subr.mxu0 %v559_v3  ;;  %499 = vmatprep.subr.mxu1 %v559_v3 }
  0x1d   :  { %465 = vmatpush3.msra.mxu0 %v43_v29  ;;  %500 = vmatpush3.msra.mxu1 %v132_v30 }
  0x1e   :  { %466 = vmatprep.subr.mxu0 %v559_v3  ;;  %501 = vmatprep.subr.mxu1 %v559_v3 }
  0x1f   :  { %467 = vmatpush3.msra.mxu0 %v42_v31  ;;  %502 = vmatpush3.msra.mxu1 %v131_v32 }
  0x20   :  { %468 = vmatprep.subr.mxu0 %v559_v3  ;;  %503 = vmatprep.subr.mxu1 %v559_v3 }
  0x21   :  { %469 = vmatpush3.msra.mxu0 %v41_v33  ;;  %470 = vmatprep.mubr.msk.f32.mxu0 %vm560_vm0, %v559_v3 }
  0x22   :  { %504 = vmatpush3.msra.mxu1 %v130_v34  ;;  %505 = vmatprep.mubr.msk.f32.mxu1 %vm560_vm0, %v559_v3  ;;  %v303_v34 = vld [vmem:[%s790_s5] sm:$0xff] }
  0x23   :  { %471 = vmatmul.mubr.f32.vlgmr.msra.gmra.mxu0 %v40_v35  ;;  %506 = vmatmul.mubr.f32.vlgmr.msra.gmra.mxu1 %v129_v36 }
  0x24   :  { %521 = vset.pattern.permute.xlu1 %v562_v47  ;;  %522 = vset.pattern.permute.xlu0 %v562_v47 }
  0x41   :  { %s509_s1 = spop %508 }
  0x42   :  { %v127_v38 = vstv %s509_s1 }
  0xe3   :  { %v123_v39 = vpop.f32.mrf.mxu0  ;;  %v212_v40 = vpop.f32.mrf.mxu1 }
  0xe4   :  { %v128_v41 = vmul.f32 %v127_v38, %v123_v39  ;;  %v216_v44 = vmul.f32 %v212_v40, %v127_v38 }
  0xe5   :  { %v472_v42 = vpop.f32.mrf.mxu0  ;;  %v507_v43 = vpop.f32.mrf.mxu1 }
  0xe6   :  { %v239_v45 = vsel %vm227_vm2, %v128_v41, -inf  ;;  %v270_v46 = vsel %vm227_vm2, %v216_v44, -inf  ;;  %v264_v5 = vsel %vm227_vm2, %v128_v41, 0.0  ;;  %v294_v7 = vsel %vm227_vm2, %v216_v44, 0.0 }
  0xe7   :  { %240 = vmax.xlane.f32.xlu0 %v239_v45  ;;  %v226_v8 = vsel %vm225_vm3, %v128_v41, 0.0  ;;  %v233_v10 = vsel %vm225_vm3, %v216_v44, 0.0 }
  0xe8   :  { %v228_v9 = vsel %vm227_vm2, %v226_v8, 0.0  ;;  %v234_v11 = vsel %vm227_vm2, %v233_v10, 0.0 }
  0xeb   :  { %271 = vmax.xlane.f32.xlu0 %v270_v46 }
 0x170   :  { %v241_v49 = vpop.xlane.xlu0 %240 }
 0x171   :  { %v243_v50 = vmax.f32 %v242_v48, %v241_v49 }
 0x173   :  { %v244_v52 = vsub.f32 %v242_v48, %v243_v50  ;;  %269 = vst.msk [vmem:[#allocation2] sm:$0xff] %vm33_vm1, %v243_v50  ;;  %251 = vperm.xlu1 %521, %v243_v50  }
 0x174   :  { %v272_v53 = vpop.xlane.xlu0 %271 }
 0x175   :  { %v274_v54 = vmax.f32 %v273_v51, %v272_v53  ;;  %v245_v12 = vmul.f32 1.442695, %v244_v52 }
 0x177   :  { %v275_v55 = vsub.f32 %v273_v51, %v274_v54  ;;  %299 = vst.msk [vmem:[#allocation6] sm:$0xff] %vm33_vm1, %v274_v54  ;;  %282 = vperm.xlu1 %521, %v274_v54  }
 0x179   :  { %v276_v13 = vmul.f32 1.442695, %v275_v55 }
 0x17a   :  { %v304_v35 = vld [vmem:[#allocation2] sm:$0xff] }
 0x17e   :  { %v320_v50 = vld [vmem:[#allocation6] sm:$0xff] }
 0x1ee   :  { %v252_v56 = vpop.permute.xlu1 %251 }
 0x1ef   :  { %v254_v57 = vsub.f32 %v128_v41, %v252_v56 }
 0x1f1   :  { %v255_v58 = vmul.f32 1.442695, %v254_v57 }
 0x1f2   :  { %v283_v59 = vpop.permute.xlu1 %282 }
 0x1f3   :  { %525 = vpow2.f32 %v255_v58  ;;  %v285_v60 = vsub.f32 %v216_v44, %v283_v59 }
 0x1f5   :  { %v286_v61 = vmul.f32 1.442695, %v285_v60 }
 0x1f7   :  { %527 = vpow2.f32 %v286_v61 }
 0x1f8   :  { %529 = vpow2.f32 %v245_v12 }
 0x1f9   :  { %531 = vpow2.f32 %v276_v13 }
 0x200   :  { %v526_v63 = vpop.eup %525 }
 0x201   :  { %v257_v0 = vsel %vm227_vm2, %v526_v63, 0.0 }
 0x202   :  { %258 = vadd.xlane.f32.xlu0 %v257_v0 }
 0x204   :  { %v528_v4 = vpop.eup %527 }
 0x205   :  { %v288_v6 = vsel %vm227_vm2, %v528_v4, 0.0  ;;  %v530_v14 = vpop.eup %529 }
 0x206   :  { %265 = vadd.xlane.f32.xlu0 %v264_v5  ;;  %289 = vadd.xlane.f32.xlu1 %v288_v6  ;;  %v248_v16 = vmul.f32 %v530_v14, %v247_v15  ;;  %v532_v17 = vpop.eup %531 }
 0x207   :  { %v279_v22 = vmul.f32 %v532_v17, %v278_v19 }
 0x20a   :  { %295 = vadd.xlane.f32.xlu0 %v294_v7 }
 0x20e   :  { %229 = vadd.xlane.f32.xlu0 %v228_v9 }
 0x212   :  { %235 = vadd.xlane.f32.xlu0 %v234_v11 }
 0x28b   :  { %v259_v18 = vpop.xlane.xlu0 %258 }
 0x28c   :  { %v260_v20 = vadd.f32 %v259_v18, %v248_v16 }
 0x28e   :  { %262 = vst.msk [vmem:[#allocation3] sm:$0xff] %vm33_vm1, %v260_v20 }
 0x28f   :  { %v290_v23 = vpop.xlane.xlu1 %289  ;;  %v266_v24 = vpop.xlane.xlu0 %265 }
 0x290   :  { %v291_v25 = vadd.f32 %v290_v23, %v279_v22  ;;  %v267_v26 = vadd.f32 %v266_v24, %v263_v21 }
 0x292   :  { %292 = vst.msk [vmem:[#allocation7] sm:$0xff] %vm33_vm1, %v291_v25  ;;  %268 = vst.msk [vmem:[#allocation4] sm:$0xff] %vm33_vm1, %v267_v26 }
 0x293   :  { %v296_v28 = vpop.xlane.xlu0 %295 }
 0x294   :  { %v297_v29 = vadd.f32 %v296_v28, %v293_v27 }
 0x295   :  { %v305_v30 = vld [vmem:[#allocation3] sm:$0xff] }
 0x296   :  { %298 = vst.msk [vmem:[#allocation8] sm:$0xff] %vm33_vm1, %v297_v29  ;;  %533 = vlog2.f32 %v305_v30 }
 0x297   :  { %v230_v31 = vpop.xlane.xlu0 %229 }
 0x298   :  { %232 = vst.msk [vmem:[#allocation5] sm:$0xff] %vm33_vm1, %v230_v31 }
 0x299   :  { %v321_v32 = vld [vmem:[#allocation7] sm:$0xff]  ;;  %v311_v40 = vld [vmem:[#allocation4] sm:$0xff] }
 0x29a   :  { %535 = vlog2.f32 %v321_v32  ;;  %v312_v44 = vmul.f32 0.125, %v311_v40 }
 0x29b   :  { %v236_v33 = vpop.xlane.xlu0 %235 }
 0x29c   :  { %237 = vst.msk [vmem:[#allocation9] sm:$0xff] %vm33_vm1, %v236_v33 }
 0x29d   :  { %v327_v46 = vld [vmem:[#allocation8] sm:$0xff] }
 0x29e   :  { %v328_v52 = vmul.f32 0.125, %v327_v46 }
 0x29f   :  { %v309_v36 = vld [vmem:[#allocation5] sm:$0xff] }
 0x2a0   :  { %vm317_vm4 = vcmp.ge.f32.partialorder %v309_v36, %v304_v35 }
 0x2a1   :  { %v402_v37 = vsel %vm317_vm4, 1.0, %v559_v3 }
 0x2a2   :  { %v348_v38 = vmul.f32 %v402_v37, %v303_v34 }
 0x2a3   :  { %v534_v39 = vpop.eup %533  ;;  %v325_v53 = vld [vmem:[#allocation9] sm:$0xff] }
 0x2a4   :  { %v307_v41 = vmul.f32 0.6931472, %v534_v39  ;;  %v349_v42 = vsel %vm33_vm1, %v348_v38, 0.0  ;;  %vm333_vm5 = vcmp.ge.f32.partialorder %v325_v53, %v320_v50 }
 0x2a5   :  { %350 = vadd.xlane.f32.xlu0 %v349_v42  ;;  %v403_v63 = vsel %vm333_vm5, 1.0, %v559_v3 }
 0x2a6   :  { %v308_v43 = vadd.f32 %v307_v41, %v304_v35  ;;  %v359_v5 = vmul.f32 %v403_v63, %v303_v34 }
 0x2a7   :  { %v536_v45 = vpop.eup %535 }
 0x2a8   :  { %v310_v47 = vsub.f32 %v308_v43, %v309_v36  ;;  %v313_v48 = vsub.f32 %v308_v43, %v312_v44  ;;  %v323_v49 = vmul.f32 0.6931472, %v536_v45  ;;  %v360_v6 = vsel %vm33_vm1, %v359_v5, 0.0 }
 0x2aa   :  { %v324_v51 = vadd.f32 %v323_v49, %v320_v50  ;;  %v314_v54 = vmul.f32 0.9, %v310_v47  ;;  %v315_v55 = vmul.f32 0.1, %v313_v48 }
 0x2ac   :  { %v326_v56 = vsub.f32 %v324_v51, %v325_v53  ;;  %v329_v57 = vsub.f32 %v324_v51, %v328_v52  ;;  %v316_v60 = vadd.f32 %v315_v55, %v314_v54 }
 0x2ae   :  { %v330_v58 = vmul.f32 0.9, %v326_v56  ;;  %v331_v59 = vmul.f32 0.1, %v329_v57 }
 0x2b0   :  { %v332_v61 = vadd.f32 %v331_v59, %v330_v58 }
 0x2b2   :  { %v336_v62 = vadd.f32 %v332_v61, %v316_v60 }
 0x2b4   :  { %v337_v0 = vmul.f32 0.5, %v336_v62 }
 0x2b6   :  { %v338_v4 = vsel %vm33_vm1, %v337_v0, 0.0 }
 0x2b7   :  { %339 = vadd.xlane.f32.xlu0 %v338_v4 }
 0x2bb   :  { %361 = vadd.xlane.f32.xlu0 %v360_v6 }
 0x32e   :  { %v351_v7 = vpop.xlane.xlu0 %350 }
 0x32f   :  { %v352_v8 = vrot.slane %v351_v7, 4 }
 0x331   :  { %v353_v9 = vadd.f32 %v352_v8, %v351_v7 }
 0x333   :  { %v354_v10 = vrot.slane %v353_v9, 2 }
 0x335   :  { %v355_v15 = vadd.f32 %v354_v10, %v353_v9 }
 0x337   :  { %v356_v19 = vrot.slane %v355_v15, 1 }
 0x339   :  { %v357_v24 = vadd.f32 %v356_v19, %v355_v15 }
 0x340   :  { %v340_v11 = vpop.xlane.xlu0 %339 }
 0x341   :  { %v341_v12 = vrot.slane %v340_v11, 4 }
 0x343   :  { %v342_v13 = vadd.f32 %v341_v12, %v340_v11 }
 0x344   :  { %v362_v14 = vpop.xlane.xlu0 %361 }
 0x345   :  { %v343_v16 = vrot.slane %v342_v13, 2  ;;  %v363_v17 = vrot.slane %v362_v14, 4 }
 0x347   :  { %v364_v3 = vadd.f32 %v363_v17, %v362_v14  ;;  %v344_v18 = vadd.f32 %v343_v16, %v342_v13 }
 0x349   :  { %v365_v20 = vrot.slane %v364_v3, 2  ;;  %v345_v21 = vrot.slane %v344_v18, 1 }
 0x34b   :  { %v366_v22 = vadd.f32 %v365_v20, %v364_v3  ;;  %v346_v23 = vadd.f32 %v345_v21, %v344_v18 }
 0x34d   :  { %510 = vpush %v346_v23  ;;  %v367_v25 = vrot.slane %v366_v22, 1 }
 0x34e   :  { %512 = vpush %v357_v24 }
 0x34f   :  { %v368_v26 = vadd.f32 %v367_v25, %v366_v22 }
 0x351   :  { %514 = vpush %v368_v26 }
 0x37e   :  { %s511_s4 = spop %510 }
 0x37f   :  { %s513_s5 = spop %512  ;;  %v385_v30 = vstv %s511_s4 }
 0x380   :  { %v383_v28 = vstv %s513_s5 }
 0x382   :  { %s515_s16 = spop %514 }
 0x383   :  { %v381_v27 = vstv %s515_s16 }
 0x384   :  { %v382_v29 = vsel %vm380_vm10, %v381_v27, 0.0 }
 0x385   :  { %v384_v31 = vsel %vm378_vm11, %v383_v28, %v382_v29 }
 0x386   :  { %v386_v2 = vsel %vm376_vm12, %v385_v30, %v384_v31 }
 0x387   :  { %387 = vst [vmem:[#allocation11] sm:$0xff] %v386_v2 }
 0x388   :  { %548 = shalt.err (!%p545_p4)
}
 0x389   :  { %397 = dma.vmem_to_hbm [thread:$0]  %s395_s18, 128, %s791_s6, [#allocation12]  }
 0x38a   :  { %557 = dma.done.wait [#allocation12], 128  }
 0x38b   :  { %558 = vsyncadd [#allocation12], 4294967168 }
 0x38c   :  { %401 = vsyncpa [#allocation12], 1 }

</bundles_post_ra>
